<compile_context>
chip_gen: v7x
topology: tpu7x:2x2x1
jax: 0.10.0
libtpu: 0.0.40
codegen_flags: <defaults>
</compile_context>

<pallas_src>
import functools

import jax
import jax.numpy as jnp
from jax.experimental import pallas as pl
from jax.experimental.pallas import tpu as pltpu


def _round_up(x, m):
    return ((x + m - 1) // m) * m


def _latent_nn_kernel(x1_ref, x2_ref, w1a_ref, w1b_ref, b1_ref,
                      w2_ref, b2_ref, mask_ref, o_ref):
    """Fused 2-layer MLP on one row tile.

    x1_ref   : (tm, H)         nodes_embed row tile            (act dtype)
    x2_ref   : (tm, H)         original_nodes_embed row tile   (act dtype)
    w1a_ref  : (dim_f, H)      FC_hidden weight, input cols [:H]  (act dtype)
    w1b_ref  : (dim_f, H)      FC_hidden weight, input cols [H:]  (act dtype)
    b1_ref   : (1, dim_f)      FC_hidden bias                  (f32)
    w2_ref   : (outdim, dim_f) FC_output weight                (act dtype)
    b2_ref   : (1, outdim)     FC_output bias                  (f32)
    mask_ref : (tm, 1)         per-row mask                    (f32)
    o_ref    : (tm, outdim)    output tile                     (f32)
    """
    # Contract trailing dims of both operands (i.e. x @ W^T) so the weights
    # keep the PyTorch (out, in) layout and no XLA transpose is emitted.
    dn = (((1,), (1,)), ((), ()))

    h = jax.lax.dot_general(x1_ref[...], w1a_ref[...], dn,
                            preferred_element_type=jnp.float32)
    h = h + jax.lax.dot_general(x2_ref[...], w1b_ref[...], dn,
                                preferred_element_type=jnp.float32)
    # Activation math in f32 (v5e has no bf16 VPU/EUP support).
    h = jax.nn.sigmoid(h + b1_ref[...])

    y = jax.lax.dot_general(h.astype(w2_ref.dtype), w2_ref[...], dn,
                            preferred_element_type=jnp.float32)
    y = y + b2_ref[...]
    o_ref[...] = (y * mask_ref[...]).astype(o_ref.dtype)


def latent_nn_forward(nodes_embed, original_nodes_embed, mask, params, *,
                      row_tile=512, act_dtype=jnp.bfloat16):
    """Pallas-backed forward of LatentNN.

    nodes_embed, original_nodes_embed : (B, N, H) float32
    mask                              : (B, N, 1) float32
    params: dict with W1 (dim_f, 2H), b1 (dim_f,), W2 (out, dim_f), b2 (out,)
    returns (B, N, out) float32
    """
    B, N, H = nodes_embed.shape
    dim_f, two_h = params["W1"].shape
    assert two_h == 2 * H
    outdim, dim_f2 = params["W2"].shape
    assert dim_f2 == dim_f

    M = B * N
    # Row tile: multiple of 8, at most row_tile; pad rows up to a tile
    # multiple instead of requiring divisibility.
    tile = min(_round_up(row_tile, 8), _round_up(M, 8))
    m_pad = _round_up(M, tile)

    # --- glue (plain JAX, no concat / no weight transpose) ---
    x1 = nodes_embed.reshape(M, H).astype(act_dtype)
    x2 = original_nodes_embed.reshape(M, H).astype(act_dtype)
    mask_flat = mask.reshape(M, 1).astype(jnp.float32)
    if m_pad != M:
        pad = ((0, m_pad - M), (0, 0))
        x1 = jnp.pad(x1, pad)
        x2 = jnp.pad(x2, pad)
        mask_flat = jnp.pad(mask_flat, pad)

    w1a = params["W1"][:, :H].astype(act_dtype)          # (dim_f, H)
    w1b = params["W1"][:, H:].astype(act_dtype)          # (dim_f, H)
    b1 = params["b1"].reshape(1, dim_f).astype(jnp.float32)
    w2 = params["W2"].astype(act_dtype)                  # (outdim, dim_f)
    b2 = params["b2"].reshape(1, outdim).astype(jnp.float32)

    grid = (m_pad // tile,)

    # Rough VMEM budget: double-buffered row tiles + resident weights + f32
    # intermediates, lane-padded, 2x headroom; clamp to [32 MiB, 64 MiB] so we
    # never drop below common default scoped limits nor exceed v7x physical.
    act_bytes = jnp.dtype(act_dtype).itemsize
    lane = lambda n: _round_up(max(int(n), 1), 128)
    sub = lambda n: _round_up(max(int(n), 1), 8)
    w_bytes = (2 * sub(dim_f) * lane(H) + sub(outdim) * lane(dim_f)) * act_bytes
    tile_bytes = (2 * tile * lane(H) * act_bytes     # x1, x2
                  + tile * lane(1) * 4               # mask
                  + tile * lane(outdim) * 4)         # out
    interm_bytes = tile * (lane(dim_f) + lane(outdim)) * 4
    bias_bytes = (sub(1) * lane(dim_f) + sub(1) * lane(outdim)) * 4
    est = 2 * tile_bytes + w_bytes + bias_bytes + interm_bytes
    vmem_limit = int(min(64 * 1024 * 1024, max(32 * 1024 * 1024, 2 * est)))

    out = pl.pallas_call(
        _latent_nn_kernel,
        out_shape=jax.ShapeDtypeStruct((m_pad, outdim), jnp.float32),
        grid_spec=pltpu.PrefetchScalarGridSpec(
            num_scalar_prefetch=0,
            grid=grid,
            in_specs=[
                pl.BlockSpec((tile, H), lambda i: (i, 0)),        # x1 tile
                pl.BlockSpec((tile, H), lambda i: (i, 0)),        # x2 tile
                pl.BlockSpec((dim_f, H), lambda i: (0, 0)),       # W1[:, :H]
                pl.BlockSpec((dim_f, H), lambda i: (0, 0)),       # W1[:, H:]
                pl.BlockSpec((1, dim_f), lambda i: (0, 0)),       # b1
                pl.BlockSpec((outdim, dim_f), lambda i: (0, 0)),  # W2
                pl.BlockSpec((1, outdim), lambda i: (0, 0)),      # b2
                pl.BlockSpec((tile, 1), lambda i: (i, 0)),        # mask tile
            ],
            out_specs=pl.BlockSpec((tile, outdim), lambda i: (i, 0)),
        ),
        compiler_params=pltpu.CompilerParams(
            dimension_semantics=("parallel",),
            vmem_limit_bytes=vmem_limit),
    )(x1, x2, w1a, w1b, b1, w2, b2, mask_flat)

    return out[:M].reshape(B, N, outdim)


def _reference_forward(nodes_embed, original_nodes_embed, mask, params):
    x = jnp.concatenate([nodes_embed, original_nodes_embed], axis=2)
    B, N, _ = x.shape
    x = x.reshape(B * N, -1)
    h = jax.nn.sigmoid(x @ params["W1"].T + params["b1"])
    y = h @ params["W2"].T + params["b2"]
    return y.reshape(B, N, -1) * mask


if __name__ == "__main__":
    # Small shapes consistent with the module.
    batch_size = 2
    n_max = 8
    hidden_dim = 32
    dim_f = 32
    outdim = 16

    key = jax.random.PRNGKey(0)
    k1, k2, k3, k4, k5, k6, k7 = jax.random.split(key, 7)

    nodes_embed = jax.random.normal(k1, (batch_size, n_max, hidden_dim),
                                    dtype=jnp.float32)
    original_nodes_embed = jax.random.normal(
        k2, (batch_size, n_max, hidden_dim), dtype=jnp.float32)
    mask = (jax.random.uniform(k3, (batch_size, n_max, 1)) > 0.25
            ).astype(jnp.float32)

    # nn.Linear shapes: W (out, in), b (out,)
    params = {
        "W1": 0.1 * jax.random.normal(k4, (dim_f, 2 * hidden_dim),
                                      dtype=jnp.float32),
        "b1": 0.1 * jax.random.normal(k5, (dim_f,), dtype=jnp.float32),
        "W2": 0.1 * jax.random.normal(k6, (outdim, dim_f), dtype=jnp.float32),
        "b2": 0.1 * jax.random.normal(k7, (outdim,), dtype=jnp.float32),
    }

    ref = _reference_forward(nodes_embed, original_nodes_embed, mask, params)

    # 1) f32 HBM path: tight tolerance vs. the reference.
    run_f32 = jax.jit(functools.partial(latent_nn_forward,
                                        row_tile=512, act_dtype=jnp.float32))
    out_f32 = jax.block_until_ready(
        run_f32(nodes_embed, original_nodes_embed, mask, params))
    assert out_f32.shape == (batch_size, n_max, outdim)
    assert jnp.allclose(out_f32, ref, atol=1e-4, rtol=1e-4)

    # 2) bf16 HBM path (default, memory-bound optimization): loose tolerance.
    run_bf16 = jax.jit(functools.partial(latent_nn_forward, row_tile=512))
    out_bf16 = jax.block_until_ready(
        run_bf16(nodes_embed, original_nodes_embed, mask, params))
    assert out_bf16.shape == (batch_size, n_max, outdim)
    assert jnp.allclose(out_bf16, ref, atol=5e-2, rtol=5e-2)

    # 3) Ragged row count (exercises the padding / remainder path).
    n_odd = 7
    ne_o = nodes_embed[:, :n_odd]
    oe_o = original_nodes_embed[:, :n_odd]
    mk_o = mask[:, :n_odd]
    run_odd = jax.jit(functools.partial(latent_nn_forward,
                                        row_tile=512, act_dtype=jnp.float32))
    out_odd = jax.block_until_ready(run_odd(ne_o, oe_o, mk_o, params))
    ref_odd = _reference_forward(ne_o, oe_o, mk_o, params)
    assert out_odd.shape == (batch_size, n_odd, outdim)
    assert jnp.allclose(out_odd, ref_odd, atol=1e-4, rtol=1e-4)

    print("KERNEL_OK")
</pallas_src>

<mosaic_0001>
module attributes {stable_mosaic.version = 11 : i64} {
  func.func @_latent_nn_kernel(%arg0: i32, %arg1: memref<16x32xf32, #tpu.memory_space<vmem>>, %arg2: memref<16x32xf32, #tpu.memory_space<vmem>>, %arg3: memref<32x32xf32, #tpu.memory_space<vmem>>, %arg4: memref<32x32xf32, #tpu.memory_space<vmem>>, %arg5: memref<1x32xf32, #tpu.memory_space<vmem>>, %arg6: memref<16x32xf32, #tpu.memory_space<vmem>>, %arg7: memref<1x16xf32, #tpu.memory_space<vmem>>, %arg8: memref<16x1xf32, #tpu.memory_space<vmem>>, %arg9: memref<16x16xf32, #tpu.memory_space<vmem>>) attributes {dimension_semantics = [#tpu.dimension_semantics<parallel>], iteration_bounds = array<i64: 1>, scalar_prefetch = 0 : i64, scratch_operands = 0 : i64, tpu.core_type = #tpu.core_type<tc>, window_params = [{transform_indices = @transform_0, window_bounds = array<i64: 16, 32>}, {transform_indices = @transform_1, window_bounds = array<i64: 16, 32>}, {pipeline_mode = #tpu.pipeline_mode<synchronous>, transform_indices = @transform_2, window_bounds = array<i64: 32, 32>}, {pipeline_mode = #tpu.pipeline_mode<synchronous>, transform_indices = @transform_3, window_bounds = array<i64: 32, 32>}, {pipeline_mode = #tpu.pipeline_mode<synchronous>, transform_indices = @transform_4, window_bounds = array<i64: 1, 32>}, {pipeline_mode = #tpu.pipeline_mode<synchronous>, transform_indices = @transform_5, window_bounds = array<i64: 16, 32>}, {pipeline_mode = #tpu.pipeline_mode<synchronous>, transform_indices = @transform_6, window_bounds = array<i64: 1, 16>}, {transform_indices = @transform_7, window_bounds = array<i64: 16, 1>}, {transform_indices = @transform_8, window_bounds = array<i64: 16, 16>}]} {
    %c0 = arith.constant 0 : index
    %c0_0 = arith.constant 0 : index
    %0 = vector.load %arg1[%c0, %c0_0] : memref<16x32xf32, #tpu.memory_space<vmem>>, vector<16x32xf32>
    %c0_1 = arith.constant 0 : index
    %c0_2 = arith.constant 0 : index
    %1 = vector.load %arg3[%c0_1, %c0_2] : memref<32x32xf32, #tpu.memory_space<vmem>>, vector<32x32xf32>
    %cst = arith.constant dense<0.000000e+00> : vector<16x32xf32>
    %2 = tpu.matmul %0, %1, %cst {dimension_numbers = #tpu.dot_dimension_numbers<[1], [1], [0], [0], [0, 0, 1, 0], [], []>} : vector<16x32xf32>, vector<32x32xf32>, vector<16x32xf32> -> vector<16x32xf32>
    %c0_3 = arith.constant 0 : index
    %c0_4 = arith.constant 0 : index
    %3 = vector.load %arg2[%c0_3, %c0_4] : memref<16x32xf32, #tpu.memory_space<vmem>>, vector<16x32xf32>
    %c0_5 = arith.constant 0 : index
    %c0_6 = arith.constant 0 : index
    %4 = vector.load %arg4[%c0_5, %c0_6] : memref<32x32xf32, #tpu.memory_space<vmem>>, vector<32x32xf32>
    %cst_7 = arith.constant dense<0.000000e+00> : vector<16x32xf32>
    %5 = tpu.matmul %3, %4, %cst_7 {dimension_numbers = #tpu.dot_dimension_numbers<[1], [1], [0], [0], [0, 0, 1, 0], [], []>} : vector<16x32xf32>, vector<32x32xf32>, vector<16x32xf32> -> vector<16x32xf32>
    %6 = arith.addf %2, %5 : vector<16x32xf32>
    %c0_8 = arith.constant 0 : index
    %c0_9 = arith.constant 0 : index
    %7 = vector.load %arg5[%c0_8, %c0_9] : memref<1x32xf32, #tpu.memory_space<vmem>>, vector<1x32xf32>
    %8 = vector.broadcast %7 : vector<1x32xf32> to vector<16x32xf32>
    %9 = arith.addf %6, %8 : vector<16x32xf32>
    %10 = arith.negf %9 : vector<16x32xf32>
    %11 = math.exp %10 : vector<16x32xf32>
    %cst_10 = arith.constant 1.000000e+00 : f32
    %12 = vector.broadcast %cst_10 : f32 to vector<16x32xf32>
    %13 = arith.addf %12, %11 : vector<16x32xf32>
    %14 = arith.divf %12, %13 : vector<16x32xf32>
    %c0_11 = arith.constant 0 : index
    %c0_12 = arith.constant 0 : index
    %15 = vector.load %arg6[%c0_11, %c0_12] : memref<16x32xf32, #tpu.memory_space<vmem>>, vector<16x32xf32>
    %cst_13 = arith.constant dense<0.000000e+00> : vector<16x16xf32>
    %16 = tpu.matmul %14, %15, %cst_13 {dimension_numbers = #tpu.dot_dimension_numbers<[1], [1], [0], [0], [0, 0, 1, 0], [], []>} : vector<16x32xf32>, vector<16x32xf32>, vector<16x16xf32> -> vector<16x16xf32>
    %c0_14 = arith.constant 0 : index
    %c0_15 = arith.constant 0 : index
    %17 = vector.load %arg7[%c0_14, %c0_15] : memref<1x16xf32, #tpu.memory_space<vmem>>, vector<1x16xf32>
    %18 = vector.broadcast %17 : vector<1x16xf32> to vector<16x16xf32>
    %19 = arith.addf %16, %18 : vector<16x16xf32>
    %c0_16 = arith.constant 0 : index
    %c0_17 = arith.constant 0 : index
    %20 = vector.load %arg8[%c0_16, %c0_17] : memref<16x1xf32, #tpu.memory_space<vmem>>, vector<16x1xf32>
    %21 = vector.broadcast %20 : vector<16x1xf32> to vector<16x16xf32>
    %22 = arith.mulf %19, %21 : vector<16x16xf32>
    %c0_18 = arith.constant 0 : index
    %c0_19 = arith.constant 0 : index
    %23 = vector.load %arg9[%c0_18, %c0_19] : memref<16x16xf32, #tpu.memory_space<vmem>>, vector<16x16xf32>
    tpu.vector_store %arg9[%c0_18, %c0_19], %22 {strides = array<i32>} : memref<16x16xf32, #tpu.memory_space<vmem>>, vector<16x16xf32>,
    return
  }
  func.func @transform_0(%arg0: i32) -> (i32, i32) {
    %c0_i32 = arith.constant 0 : i32
    %c0_i32_0 = arith.constant 0 : i32
    return %arg0, %c0_i32 : i32, i32
  }
  func.func @transform_1(%arg0: i32) -> (i32, i32) {
    %c0_i32 = arith.constant 0 : i32
    %c0_i32_0 = arith.constant 0 : i32
    return %arg0, %c0_i32 : i32, i32
  }
  func.func @transform_2(%arg0: i32) -> (i32, i32) {
    %c0_i32 = arith.constant 0 : i32
    %c0_i32_0 = arith.constant 0 : i32
    %c0_i32_1 = arith.constant 0 : i32
    return %c0_i32, %c0_i32_0 : i32, i32
  }
  func.func @transform_3(%arg0: i32) -> (i32, i32) {
    %c0_i32 = arith.constant 0 : i32
    %c0_i32_0 = arith.constant 0 : i32
    %c0_i32_1 = arith.constant 0 : i32
    return %c0_i32, %c0_i32_0 : i32, i32
  }
  func.func @transform_4(%arg0: i32) -> (i32, i32) {
    %c0_i32 = arith.constant 0 : i32
    %c0_i32_0 = arith.constant 0 : i32
    %c0_i32_1 = arith.constant 0 : i32
    return %c0_i32, %c0_i32_0 : i32, i32
  }
  func.func @transform_5(%arg0: i32) -> (i32, i32) {
    %c0_i32 = arith.constant 0 : i32
    %c0_i32_0 = arith.constant 0 : i32
    %c0_i32_1 = arith.constant 0 : i32
    return %c0_i32, %c0_i32_0 : i32, i32
  }
  func.func @transform_6(%arg0: i32) -> (i32, i32) {
    %c0_i32 = arith.constant 0 : i32
    %c0_i32_0 = arith.constant 0 : i32
    %c0_i32_1 = arith.constant 0 : i32
    return %c0_i32, %c0_i32_0 : i32, i32
  }
  func.func @transform_7(%arg0: i32) -> (i32, i32) {
    %c0_i32 = arith.constant 0 : i32
    %c0_i32_0 = arith.constant 0 : i32
    return %arg0, %c0_i32 : i32, i32
  }
  func.func @transform_8(%arg0: i32) -> (i32, i32) {
    %c0_i32 = arith.constant 0 : i32
    %c0_i32_0 = arith.constant 0 : i32
    return %arg0, %c0_i32 : i32, i32
  }
}

</mosaic_0001>

<bundles_post_ra>
// kernel: latent_nn_forward.1
= control target key start
LH: loop header
LB: loop body
LE: loop exit
PB: predicated region body
PF: predicated region fallthrough
CT: control target
= control target key end

     0   :  { %vm42_vm0 = vcmask 261120   ;;  %s660_s0 = inlined_call_operand.vmem [shape: f32[16,32], index: 0, kind: input, shape index: {}]   ;;  %s661_s1 = inlined_call_operand.vmem [shape: f32[16,32], index: 1, kind: input, shape index: {}]   ;;  %s662_s2 = inlined_call_operand.vmem [shape: f32[32,32], index: 2, kind: input, shape index: {}]   ;;  %s663_s3 = inlined_call_operand.vmem [shape: f32[32,32], index: 3, kind: input, shape index: {}]   ;;  %s664_s4 = inlined_call_operand.vmem [shape: f32[1,32], index: 4, kind: input, shape index: {}]   ;;  %s665_s5 = inlined_call_operand.vmem [shape: f32[16,32], index: 5, kind: input, shape index: {}]   ;;  %s666_s6 = inlined_call_operand.vmem [shape: f32[1,16], index: 6, kind: input, shape index: {}]   ;;  %s667_s7 = inlined_call_operand.vmem [shape: f32[16,1], index: 7, kind: input, shape index: {}]   ;;  %s668_s8 = inlined_call_operand.hbm [shape: f32[16,16], index: 8, kind: output, shape index: {}]  }
   0x1   :  { %v38_v0 = vld [vmem:[%s663_s3] sm:$0xff]  ;;  %v39_v1 = vld [vmem:[%s663_s3 + $0x8] sm:$0xff]  ;;  %vm573_vm1 = vmpackc.low %vm42_vm0, %vm42_vm0 }
   0x2   :  { %v32_v2 = vld [vmem:[%s662_s2] sm:$0xff]  ;;  %v444_v3 = vpack.c.bf16 %v39_v1, %v38_v0  ;;  %v33_v5 = vld [vmem:[%s662_s2 + $0x8] sm:$0xff]  ;;  %v40_v6 = vld [vmem:[%s663_s3 + $0x10] sm:$0xff] }
   0x3   :  { %v456_v7 = vpack.c.bf16 %v33_v5, %v32_v2  ;;  %v41_v8 = vld [vmem:[%s663_s3 + $0x18] sm:$0xff]  ;;  %v34_v9 = vld [vmem:[%s662_s2 + $0x10] sm:$0xff]  ;;  %v36_v13 = vld [vmem:[%s661_s1] sm:$0xff] }
   0x4   :  { %v35_v10 = vld [vmem:[%s662_s2 + $0x18] sm:$0xff]  ;;  %446 = vmatprep.subr.msk.bf16.mxu1 %vm573_vm1, %v444_v3  ;;  %v450_v11 = vpack.c.bf16 %v41_v8, %v40_v6  ;;  %v30_v14 = vld [vmem:[%s660_s0] sm:$0xff] }
   0x5   :  { %v462_v12 = vpack.c.bf16 %v35_v10, %v34_v9  ;;  %458 = vmatprep.subr.msk.bf16.mxu0 %vm573_vm1, %v456_v7  ;;  %449 = vmatpush3.bf16.xpose.msk.msra.mxu1 %vm573_vm1, %v444_v3 }
   0x6   :  { %13 = vsyncpa [#allocation3], 0  ;;  %461 = vmatpush3.bf16.xpose.msk.msra.mxu0 %vm573_vm1, %v456_v7  ;;  %452 = vmatprep.subr.msk.bf16.mxu1 %vm573_vm1, %v450_v11  ;;  %v37_v15 = vld [vmem:[%s661_s1 + $0x8] sm:$0xff]  ;;  %v250_v17 = vld [vmem:[%s665_s5] sm:$0xff]  ;;  %v513_v21 = vmov 0   ;;  %s514_s12 = smov [#allocation2]  }
   0x7   :  { %464 = vmatprep.subr.msk.bf16.mxu0 %vm573_vm1, %v462_v12  ;;  %423 = vmatprep.mubr.msk.f32.mxu1 %vm42_vm0, %v36_v13  ;;  %v31_v16 = vld [vmem:[%s660_s0 + $0x8] sm:$0xff]  ;;  %v346_v20 = vld [vmem:[%s667_s7] sm:$0xff]  ;;  %s368_s13 = sshll.u32 %s514_s12, 4  ;;  %vm360_vm2 = vcmask 130048   ;;  %s369_s13 = int_to_ptr.vmem [resolvable:$true] %s368_s13 }
   0x8   :  { %434 = vmatprep.mubr.msk.f32.mxu0 %vm42_vm0, %v30_v14  ;;  %v251_v18 = vld [vmem:[%s665_s5 + $0x8] sm:$0xff]  ;;  %480 = vset.pattern.permute.xlu0 %v513_v21  ;;  %v391_v25 = vld [vmem:[%s664_s4] ss:$0 sm:$0xff]  ;;  %s489_s14 = scalar_lea.vmem %s369_s13, 256  ;;  %p494_p1 = scmp.lt.s32.totalorder %s369_s13, %s369_s13 }
   0x9   :  { %v468_v19 = vpack.c.bf16 %v251_v18, %v250_v17  ;;  %350 = vperm.xlu0 %480, %v346_v20   ;;  %v347_v22 = vld [vmem:[%s667_s7 + $0x8] sm:$0xff]  ;;  %v394_v41 = vld [vmem:[%s666_s6] ss:$0 sm:$0xff]  ;;  %p490_p0 = scmp.ne.s32.totalorder %s369_s13, %s489_s14  ;;  %p495_p2 = scmp.lt.s32.totalorder %s489_s14, %s489_s14 }
   0xb   :  { %p496_p3 = por %p495_p2, %p494_p1 }
   0xd   :  { %455 = vmatpush3.bf16.xpose.msk.msra.mxu1 %vm573_vm1, %v450_v11  ;;  %355 = vperm.xlu0 %480, %v347_v22   ;;  %p497_p4 = pnand %p496_p3, %p490_p0 }
   0xe   :  { %467 = vmatpush3.bf16.xpose.msk.msra.mxu0 %vm573_vm1, %v462_v12  ;;  %470 = vmatprep.subr.msk.bf16.mxu1 %vm573_vm1, %v468_v19 }
  0x14   :  { %424 = vmatmul.mubr.msk.f32.vlgmr.msra.gmra.mrb[0].mxu1 %vm42_vm0, %v37_v15 }
  0x15   :  { %435 = vmatmul.mubr.msk.f32.vlgmr.msra.gmra.mrb[0].mxu0 %vm42_vm0, %v31_v16  ;;  %473 = vmatpush3.bf16.xpose.msk.msra.mxu1 %vm573_vm1, %v468_v19 }
  0x88   :  { %v351_v40 = vpop.permute.xlu0 %350 }
  0x8c   :  { %v356_v45 = vpop.permute.xlu0 %355 }
  0xe7   :  { %v425_v23 = vpop.f32.mrb[0].mxu1 }
  0xe8   :  { %v436_v24 = vpop.f32.mrb[0].mxu0  ;;  %v127_v26 = vpop.f32.mrb[1].mxu1 }
  0xe9   :  { %v226_v27 = vadd.f32 %v436_v24, %v425_v23  ;;  %v220_v28 = vpop.f32.mrb[1].mxu0 }
  0xea   :  { %v221_v29 = vadd.f32 %v220_v28, %v127_v26 }
  0xeb   :  { %v237_v30 = vadd.f32 %v391_v25, %v226_v27 }
  0xec   :  { %v236_v31 = vadd.f32 %v391_v25, %v221_v29 }
  0xed   :  { %v393_v32 = vmul.f32 -1.442695, %v237_v30 }
  0xee   :  { %v392_v33 = vmul.f32 -1.442695, %v236_v31 }
  0xef   :  { %481 = vpow2.f32 %v393_v32 }
  0xf0   :  { %483 = vpow2.f32 %v392_v33 }
  0xf9   :  { %v482_v34 = vpop.eup %481 }
  0xfa   :  { %v484_v35 = vpop.eup %483  ;;  %v245_v36 = vadd.f32 1.0, %v482_v34 }
  0xfb   :  { %v244_v37 = vadd.f32 1.0, %v484_v35 }
  0xfd   :  { %485 = vrcp.f32 %v244_v37 }
  0xfe   :  { %487 = vrcp.f32 %v245_v36 }
 0x107   :  { %v486_v38 = vpop.eup %485 }
 0x108   :  { %v488_v39 = vpop.eup %487  ;;  %441 = vmatprep.mubr.msk.f32.mxu1 %vm42_vm0, %v486_v38 }
 0x109   :  { %442 = vmatmul.mubr.msk.f32.vlgmr.msra.gmra.mrb[2].mxu1 %vm42_vm0, %v488_v39 }
 0x1dc   :  { %v443_v42 = vpop.f32.mrb[2].mxu1 }
 0x1dd   :  { %v343_v43 = vadd.f32 %v443_v42, %v394_v41  ;;  %v337_v44 = vpop.f32.mrb[3].mxu1 }
 0x1de   :  { %v338_v46 = vadd.f32 %v394_v41, %v337_v44 }
 0x1df   :  { %v359_v47 = vmul.f32 %v356_v45, %v343_v43 }
 0x1e0   :  { %v358_v48 = vmul.f32 %v351_v40, %v338_v46 }
 0x1e1   :  { %362 = vst.msk [vmem:[#allocation2 + $0x8] sm:$0xff] %vm360_vm2, %v359_v47 }
 0x1e2   :  { %361 = vst.msk [vmem:[#allocation2] sm:$0xff] %vm360_vm2, %v358_v48 }
 0x1e3   :  { %500 = shalt.err (!%p497_p4)
}
 0x1e4   :  { %s501_s16 = scalar_lea.hbm %s668_s8, 256 }
 0x1e5   :  { %p502_p5 = scmp.ne.s32.totalorder %s668_s8, %s501_s16  ;;  %p505_p6 = scmp.lt.u32.totalorder %s501_s16, %s668_s8 }
 0x1e7   :  { %p507_p7 = pnand %p505_p6, %p502_p5 }
 0x1e9   :  { %510 = shalt.err (!%p507_p7)
}
 0x1ea   :  { %s515_s21 = smov 128   ;;  %s516_s22 = smov 8  }
 0x1eb   :  { %374 = dma.vmem_to_hbm [thread:$0]  %s369_s13, 256, %s668_s8, [#allocation3], %s515_s21, %s515_s21, %s516_s22  }
 0x1ec   :  { %511 = dma.done.wait [#allocation3], 256  }
 0x1ed   :  { %512 = vsyncadd [#allocation3], 4294967040 }
 0x1ee   :  { %378 = vsyncpa [#allocation3], 1 }

</bundles_post_ra>
